<compile_context>
chip_gen: v7x
topology: tpu7x:2x2x1
jax: 0.10.0
libtpu: 0.0.40
codegen_flags: <defaults>
</compile_context>

<pallas_src>
import jax
import jax.numpy as jnp
import numpy as np
from jax.experimental import pallas as pl
from jax.experimental.pallas import tpu as pltpu


def gru_kernel(x_ref, h0_ref, wi_ref, wh_ref, bias_ref, head_ref, out_ref):
    TB = x_ref.shape[0]
    Bp, H = h0_ref.shape
    T = TB // Bp
    H3 = 3 * H

    # ---- Hoisted, time-invariant input projection (one packed MXU pass over
    # all timesteps).  Gate column order matches PyTorch: [r | z | n]; the
    # r/z biases are pre-folded (b_ih + b_hh), b_in sits in the n columns.
    x_bf = x_ref[...].astype(jnp.bfloat16)                       # (T*Bp, D)
    gx_all = jnp.dot(x_bf, wi_ref[...],
                     preferred_element_type=jnp.float32)         # (T*Bp, 3H)
    gx_all = gx_all + bias_ref[0:1, :]

    # b_hn (applied inside the r*(...) term), broadcast ONCE before the loop.
    bhn = jnp.broadcast_to(bias_ref[1:2, 0:H], (Bp, H))          # (Bp, H)

    wh = wh_ref[...]                                             # (H, 3H) bf16
    h = h0_ref[...]                                              # (Bp, H) f32

    # ---- Fully-unrolled serial recurrence: one fused recurrent matmul per
    # step; gate peeling is static lane slicing (XLU), gate math stays f32.
    for t in range(T):
        gh = jnp.dot(h.astype(jnp.bfloat16), wh,
                     preferred_element_type=jnp.float32)         # (Bp, 3H)
        gx = gx_all[t * Bp:(t + 1) * Bp]                         # (Bp, 3H)
        r = jax.nn.sigmoid(gx[:, 0:H] + gh[:, 0:H])
        z = jax.nn.sigmoid(gx[:, H:2 * H] + gh[:, H:2 * H])
        n = jnp.tanh(gx[:, 2 * H:H3] + r * (gh[:, 2 * H:H3] + bhn))
        h = (1.0 - z) * n + z * h

    # ---- Head: Linear(H, 2) + 2-class Softmax, computed exactly as
    # sigmoid(l_i - l_j) with pre-differenced weights (row H of head_ref is
    # the differenced bias).  No cross-lane reductions needed.
    w1d = head_ref[0:H, :].astype(jnp.bfloat16)                  # (H, 2)
    b1d = head_ref[H:H + 1, :]                                   # (1, 2)
    logit_diff = jnp.dot(h.astype(jnp.bfloat16), w1d,
                         preferred_element_type=jnp.float32) + b1d
    pred = jax.nn.sigmoid(logit_diff)                            # (Bp, 2)

    # Single merged output: [ h | pred ].
    out_ref[:, 0:H] = h
    out_ref[:, H:H + 2] = pred


def pack_gru_params(params, hidden_size):
    """One-time parameter packing (keep OUT of the per-call jitted path)."""
    H = hidden_size
    wih = jnp.asarray(params["weight_ih"], jnp.float32)          # (3H, D)
    whh = jnp.asarray(params["weight_hh"], jnp.float32)          # (3H, H)
    bih = jnp.asarray(params["bias_ih"], jnp.float32)            # (3H,)
    bhh = jnp.asarray(params["bias_hh"], jnp.float32)            # (3H,)
    w1 = jnp.asarray(params["w1"], jnp.float32)                  # (2, H)
    b1 = jnp.asarray(params["b1"], jnp.float32)                  # (2,)

    # Packed, transposed weights; MXU operands stored as bf16 (f32 accumulate
    # in-kernel).  Column gate order stays PyTorch's [r | z | n].
    wi_all = wih.T.astype(jnp.bfloat16)                          # (D, 3H)
    wh_all = whh.T.astype(jnp.bfloat16)                          # (H, 3H)

    # Bias slab (f32): row0 = [b_r+b'_r | b_z+b'_z | b_in]  (added to gx_all)
    #                  row1 = [b_hn | 0 ... 0]               (inside r*(...))
    row0 = jnp.concatenate([bih[0:H] + bhh[0:H],
                            bih[H:2 * H] + bhh[H:2 * H],
                            bih[2 * H:3 * H]])
    row1 = jnp.concatenate([bhh[2 * H:3 * H], jnp.zeros((2 * H,), jnp.float32)])
    bias_all = jnp.stack([row0, row1])                           # (2, 3H)

    # Head slab (f32): softmax over 2 classes == sigmoid of the logit
    # difference, so pack differenced weights/bias.  Rows 0..H-1 = W, row H = b.
    w1d = jnp.stack([w1[0] - w1[1], w1[1] - w1[0]], axis=1)      # (H, 2)
    b1d = jnp.stack([b1[0] - b1[1], b1[1] - b1[0]]).reshape(1, 2)
    head_all = jnp.concatenate([w1d, b1d], axis=0)               # (H+1, 2)

    return {"wi_all": wi_all, "wh_all": wh_all,
            "bias_all": bias_all, "head_all": head_all}


def my_gru_forward(input_sequence, hidden, packed):
    """input_sequence: (T, B, D) f32 (time-major); hidden: (1, B, H) f32."""
    T, B, D = input_sequence.shape
    H = hidden.shape[-1]
    Bp = ((B + 7) // 8) * 8                     # pad batch to full sublanes

    x_p = jnp.zeros((T, Bp, D), jnp.float32).at[:, :B, :].set(input_sequence)
    h0_p = jnp.zeros((Bp, H), jnp.float32).at[:B, :].set(hidden.reshape(B, H))
    x2d = x_p.reshape(T * Bp, D)

    vmem = pl.BlockSpec(memory_space=pltpu.MemorySpace.VMEM)
    out = pl.pallas_call(
        gru_kernel,
        out_shape=jax.ShapeDtypeStruct((Bp, H + 2), jnp.float32),
        in_specs=[vmem] * 6,
        out_specs=vmem,
    )(x2d, h0_p, packed["wi_all"], packed["wh_all"],
      packed["bias_all"], packed["head_all"])

    pred = out[:B, H:H + 2]
    h_out = out[:B, 0:H].reshape(1, B, H)
    return pred, h_out


def reference_forward(input_sequence, hidden, params):
    """Pure-JAX f32 reference matching torch.nn.GRU -> Linear -> Softmax."""
    H = hidden.shape[-1]
    wih, whh = params["weight_ih"], params["weight_hh"]
    bih, bhh = params["bias_ih"], params["bias_hh"]
    hi = jax.lax.Precision.HIGHEST

    def step(h, x_t):
        gx = jnp.dot(x_t, wih.T, precision=hi) + bih
        gh = jnp.dot(h, whh.T, precision=hi) + bhh
        r = jax.nn.sigmoid(gx[:, 0:H] + gh[:, 0:H])
        z = jax.nn.sigmoid(gx[:, H:2 * H] + gh[:, H:2 * H])
        n = jnp.tanh(gx[:, 2 * H:3 * H] + r * gh[:, 2 * H:3 * H])
        h_new = (1.0 - z) * n + z * h
        return h_new, h_new

    h_final, outs = jax.lax.scan(step, hidden[0], input_sequence)
    logits = jnp.dot(outs[-1], params["w1"].T, precision=hi) + params["b1"]
    pred = jax.nn.softmax(logits, axis=1)
    return pred, h_final[None]


if __name__ == "__main__":
    T, B, D, H = 8, 2, 4, 32   # seq_len, batch, input_dim, hidden_size

    key = jax.random.PRNGKey(0)
    ks = jax.random.split(key, 8)
    bound = 1.0 / np.sqrt(H)
    params = {
        "weight_ih": jax.random.uniform(ks[0], (3 * H, D), jnp.float32, -bound, bound),
        "weight_hh": jax.random.uniform(ks[1], (3 * H, H), jnp.float32, -bound, bound),
        "bias_ih":   jax.random.uniform(ks[2], (3 * H,), jnp.float32, -bound, bound),
        "bias_hh":   jax.random.uniform(ks[3], (3 * H,), jnp.float32, -bound, bound),
        "w1":        jax.random.uniform(ks[4], (2, H), jnp.float32, -bound, bound),
        "b1":        jax.random.uniform(ks[5], (2,), jnp.float32, -bound, bound),
    }

    x = jax.random.normal(ks[6], (T, B, D), jnp.float32)
    h0 = jax.random.normal(ks[7], (1, B, H), jnp.float32)

    # One-time packing (not on the per-call path).
    packed = jax.tree_util.tree_map(jax.block_until_ready,
                                    pack_gru_params(params, H))

    fwd = jax.jit(my_gru_forward)
    pred, h_out = fwd(x, h0, packed)
    jax.block_until_ready((pred, h_out))

    pred_ref, h_ref = reference_forward(x, h0, params)
    # bf16 MXU operands (f32 accumulation) compound ~1e-3..5e-3 of error over
    # the 8 serial recurrence steps vs the true-f32 reference, hence 2e-2.
    np.testing.assert_allclose(np.asarray(pred), np.asarray(pred_ref),
                               rtol=2e-2, atol=2e-2)
    np.testing.assert_allclose(np.asarray(h_out), np.asarray(h_ref),
                               rtol=2e-2, atol=2e-2)

    print("KERNEL_OK")
</pallas_src>

<mosaic_0001>
module attributes {stable_mosaic.version = 11 : i64} {
  func.func @gru_kernel(%arg0: memref<64x4xf32, #tpu.memory_space<vmem>>, %arg1: memref<8x32xf32, #tpu.memory_space<vmem>>, %arg2: memref<4x96xbf16, #tpu.memory_space<vmem>>, %arg3: memref<32x96xbf16, #tpu.memory_space<vmem>>, %arg4: memref<2x96xf32, #tpu.memory_space<vmem>>, %arg5: memref<33x2xf32, #tpu.memory_space<vmem>>, %arg6: memref<8x34xf32, #tpu.memory_space<vmem>>) attributes {dimension_semantics = [], scalar_prefetch = 0 : i64, scratch_operands = 0 : i64, tpu.core_type = #tpu.core_type<tc>} {
    %c0 = arith.constant 0 : index
    %c0_0 = arith.constant 0 : index
    %0 = vector.load %arg0[%c0, %c0_0] : memref<64x4xf32, #tpu.memory_space<vmem>>, vector<64x4xf32>
    %1 = arith.truncf %0 : vector<64x4xf32> to vector<64x4xbf16>
    %c0_1 = arith.constant 0 : index
    %c0_2 = arith.constant 0 : index
    %2 = vector.load %arg2[%c0_1, %c0_2] : memref<4x96xbf16, #tpu.memory_space<vmem>>, vector<4x96xbf16>
    %cst = arith.constant dense<0.000000e+00> : vector<64x96xf32>
    %3 = tpu.matmul %1, %2, %cst {dimension_numbers = #tpu.dot_dimension_numbers<[1], [0], [0], [1], [0, 0, 1, 1], [], []>} : vector<64x4xbf16>, vector<4x96xbf16>, vector<64x96xf32> -> vector<64x96xf32>
    %c0_3 = arith.constant 0 : index
    %c0_4 = arith.constant 0 : index
    %4 = vector.load %arg4[%c0_3, %c0_4] : memref<2x96xf32, #tpu.memory_space<vmem>>, vector<1x96xf32>
    %5 = vector.broadcast %4 : vector<1x96xf32> to vector<64x96xf32>
    %6 = arith.addf %3, %5 : vector<64x96xf32>
    %c1 = arith.constant 1 : index
    %c0_5 = arith.constant 0 : index
    %7 = vector.load %arg4[%c1, %c0_5] : memref<2x96xf32, #tpu.memory_space<vmem>>, vector<1x32xf32>
    %8 = vector.shape_cast %7 : vector<1x32xf32> to vector<1x32xf32>
    %9 = vector.broadcast %8 : vector<1x32xf32> to vector<8x32xf32>
    %c0_6 = arith.constant 0 : index
    %c0_7 = arith.constant 0 : index
    %10 = vector.load %arg3[%c0_6, %c0_7] : memref<32x96xbf16, #tpu.memory_space<vmem>>, vector<32x96xbf16>
    %c0_8 = arith.constant 0 : index
    %c0_9 = arith.constant 0 : index
    %11 = vector.load %arg1[%c0_8, %c0_9] : memref<8x32xf32, #tpu.memory_space<vmem>>, vector<8x32xf32>
    %12 = arith.truncf %11 : vector<8x32xf32> to vector<8x32xbf16>
    %cst_10 = arith.constant dense<0.000000e+00> : vector<8x96xf32>
    %13 = tpu.matmul %12, %10, %cst_10 {dimension_numbers = #tpu.dot_dimension_numbers<[1], [0], [0], [1], [0, 0, 1, 1], [], []>} : vector<8x32xbf16>, vector<32x96xbf16>, vector<8x96xf32> -> vector<8x96xf32>
    %14 = vector.extract_strided_slice %6 {offsets = [0, 0], sizes = [8, 96], strides = [1, 1]} : vector<64x96xf32> to vector<8x96xf32>
    %15 = vector.extract_strided_slice %14 {offsets = [0, 0], sizes = [8, 32], strides = [1, 1]} : vector<8x96xf32> to vector<8x32xf32>
    %16 = vector.extract_strided_slice %13 {offsets = [0, 0], sizes = [8, 32], strides = [1, 1]} : vector<8x96xf32> to vector<8x32xf32>
    %17 = arith.addf %15, %16 : vector<8x32xf32>
    %18 = arith.negf %17 : vector<8x32xf32>
    %19 = math.exp %18 : vector<8x32xf32>
    %cst_11 = arith.constant 1.000000e+00 : f32
    %20 = vector.broadcast %cst_11 : f32 to vector<8x32xf32>
    %21 = arith.addf %20, %19 : vector<8x32xf32>
    %22 = arith.divf %20, %21 : vector<8x32xf32>
    %23 = vector.extract_strided_slice %14 {offsets = [0, 32], sizes = [8, 32], strides = [1, 1]} : vector<8x96xf32> to vector<8x32xf32>
    %24 = vector.extract_strided_slice %13 {offsets = [0, 32], sizes = [8, 32], strides = [1, 1]} : vector<8x96xf32> to vector<8x32xf32>
    %25 = arith.addf %23, %24 : vector<8x32xf32>
    %26 = arith.negf %25 : vector<8x32xf32>
    %27 = math.exp %26 : vector<8x32xf32>
    %cst_12 = arith.constant 1.000000e+00 : f32
    %28 = vector.broadcast %cst_12 : f32 to vector<8x32xf32>
    %29 = arith.addf %28, %27 : vector<8x32xf32>
    %30 = arith.divf %28, %29 : vector<8x32xf32>
    %31 = vector.extract_strided_slice %14 {offsets = [0, 64], sizes = [8, 32], strides = [1, 1]} : vector<8x96xf32> to vector<8x32xf32>
    %32 = vector.extract_strided_slice %13 {offsets = [0, 64], sizes = [8, 32], strides = [1, 1]} : vector<8x96xf32> to vector<8x32xf32>
    %33 = arith.addf %32, %9 : vector<8x32xf32>
    %34 = arith.mulf %22, %33 : vector<8x32xf32>
    %35 = arith.addf %31, %34 : vector<8x32xf32>
    %36 = math.tanh %35 : vector<8x32xf32>
    %cst_13 = arith.constant 1.000000e+00 : f32
    %37 = vector.broadcast %cst_13 : f32 to vector<8x32xf32>
    %38 = arith.subf %37, %30 : vector<8x32xf32>
    %39 = arith.mulf %38, %36 : vector<8x32xf32>
    %40 = arith.mulf %30, %11 : vector<8x32xf32>
    %41 = arith.addf %39, %40 : vector<8x32xf32>
    %42 = arith.truncf %41 : vector<8x32xf32> to vector<8x32xbf16>
    %cst_14 = arith.constant dense<0.000000e+00> : vector<8x96xf32>
    %43 = tpu.matmul %42, %10, %cst_14 {dimension_numbers = #tpu.dot_dimension_numbers<[1], [0], [0], [1], [0, 0, 1, 1], [], []>} : vector<8x32xbf16>, vector<32x96xbf16>, vector<8x96xf32> -> vector<8x96xf32>
    %44 = vector.extract_strided_slice %6 {offsets = [8, 0], sizes = [8, 96], strides = [1, 1]} : vector<64x96xf32> to vector<8x96xf32>
    %45 = vector.extract_strided_slice %44 {offsets = [0, 0], sizes = [8, 32], strides = [1, 1]} : vector<8x96xf32> to vector<8x32xf32>
    %46 = vector.extract_strided_slice %43 {offsets = [0, 0], sizes = [8, 32], strides = [1, 1]} : vector<8x96xf32> to vector<8x32xf32>
    %47 = arith.addf %45, %46 : vector<8x32xf32>
    %48 = arith.negf %47 : vector<8x32xf32>
    %49 = math.exp %48 : vector<8x32xf32>
    %cst_15 = arith.constant 1.000000e+00 : f32
    %50 = vector.broadcast %cst_15 : f32 to vector<8x32xf32>
    %51 = arith.addf %50, %49 : vector<8x32xf32>
    %52 = arith.divf %50, %51 : vector<8x32xf32>
    %53 = vector.extract_strided_slice %44 {offsets = [0, 32], sizes = [8, 32], strides = [1, 1]} : vector<8x96xf32> to vector<8x32xf32>
    %54 = vector.extract_strided_slice %43 {offsets = [0, 32], sizes = [8, 32], strides = [1, 1]} : vector<8x96xf32> to vector<8x32xf32>
    %55 = arith.addf %53, %54 : vector<8x32xf32>
    %56 = arith.negf %55 : vector<8x32xf32>
    %57 = math.exp %56 : vector<8x32xf32>
    %cst_16 = arith.constant 1.000000e+00 : f32
    %58 = vector.broadcast %cst_16 : f32 to vector<8x32xf32>
    %59 = arith.addf %58, %57 : vector<8x32xf32>
    %60 = arith.divf %58, %59 : vector<8x32xf32>
    %61 = vector.extract_strided_slice %44 {offsets = [0, 64], sizes = [8, 32], strides = [1, 1]} : vector<8x96xf32> to vector<8x32xf32>
    %62 = vector.extract_strided_slice %43 {offsets = [0, 64], sizes = [8, 32], strides = [1, 1]} : vector<8x96xf32> to vector<8x32xf32>
    %63 = arith.addf %62, %9 : vector<8x32xf32>
    %64 = arith.mulf %52, %63 : vector<8x32xf32>
    %65 = arith.addf %61, %64 : vector<8x32xf32>
    %66 = math.tanh %65 : vector<8x32xf32>
    %cst_17 = arith.constant 1.000000e+00 : f32
    %67 = vector.broadcast %cst_17 : f32 to vector<8x32xf32>
    %68 = arith.subf %67, %60 : vector<8x32xf32>
    %69 = arith.mulf %68, %66 : vector<8x32xf32>
    %70 = arith.mulf %60, %41 : vector<8x32xf32>
    %71 = arith.addf %69, %70 : vector<8x32xf32>
    %72 = arith.truncf %71 : vector<8x32xf32> to vector<8x32xbf16>
    %cst_18 = arith.constant dense<0.000000e+00> : vector<8x96xf32>
    %73 = tpu.matmul %72, %10, %cst_18 {dimension_numbers = #tpu.dot_dimension_numbers<[1], [0], [0], [1], [0, 0, 1, 1], [], []>} : vector<8x32xbf16>, vector<32x96xbf16>, vector<8x96xf32> -> vector<8x96xf32>
    %74 = vector.extract_strided_slice %6 {offsets = [16, 0], sizes = [8, 96], strides = [1, 1]} : vector<64x96xf32> to vector<8x96xf32>
    %75 = vector.extract_strided_slice %74 {offsets = [0, 0], sizes = [8, 32], strides = [1, 1]} : vector<8x96xf32> to vector<8x32xf32>
    %76 = vector.extract_strided_slice %73 {offsets = [0, 0], sizes = [8, 32], strides = [1, 1]} : vector<8x96xf32> to vector<8x32xf32>
    %77 = arith.addf %75, %76 : vector<8x32xf32>
    %78 = arith.negf %77 : vector<8x32xf32>
    %79 = math.exp %78 : vector<8x32xf32>
    %cst_19 = arith.constant 1.000000e+00 : f32
    %80 = vector.broadcast %cst_19 : f32 to vector<8x32xf32>
    %81 = arith.addf %80, %79 : vector<8x32xf32>
    %82 = arith.divf %80, %81 : vector<8x32xf32>
    %83 = vector.extract_strided_slice %74 {offsets = [0, 32], sizes = [8, 32], strides = [1, 1]} : vector<8x96xf32> to vector<8x32xf32>
    %84 = vector.extract_strided_slice %73 {offsets = [0, 32], sizes = [8, 32], strides = [1, 1]} : vector<8x96xf32> to vector<8x32xf32>
    %85 = arith.addf %83, %84 : vector<8x32xf32>
    %86 = arith.negf %85 : vector<8x32xf32>
    %87 = math.exp %86 : vector<8x32xf32>
    %cst_20 = arith.constant 1.000000e+00 : f32
    %88 = vector.broadcast %cst_20 : f32 to vector<8x32xf32>
    %89 = arith.addf %88, %87 : vector<8x32xf32>
    %90 = arith.divf %88, %89 : vector<8x32xf32>
    %91 = vector.extract_strided_slice %74 {offsets = [0, 64], sizes = [8, 32], strides = [1, 1]} : vector<8x96xf32> to vector<8x32xf32>
    %92 = vector.extract_strided_slice %73 {offsets = [0, 64], sizes = [8, 32], strides = [1, 1]} : vector<8x96xf32> to vector<8x32xf32>
    %93 = arith.addf %92, %9 : vector<8x32xf32>
    %94 = arith.mulf %82, %93 : vector<8x32xf32>
    %95 = arith.addf %91, %94 : vector<8x32xf32>
    %96 = math.tanh %95 : vector<8x32xf32>
    %cst_21 = arith.constant 1.000000e+00 : f32
    %97 = vector.broadcast %cst_21 : f32 to vector<8x32xf32>
    %98 = arith.subf %97, %90 : vector<8x32xf32>
    %99 = arith.mulf %98, %96 : vector<8x32xf32>
    %100 = arith.mulf %90, %71 : vector<8x32xf32>
    %101 = arith.addf %99, %100 : vector<8x32xf32>
    %102 = arith.truncf %101 : vector<8x32xf32> to vector<8x32xbf16>
    %cst_22 = arith.constant dense<0.000000e+00> : vector<8x96xf32>
    %103 = tpu.matmul %102, %10, %cst_22 {dimension_numbers = #tpu.dot_dimension_numbers<[1], [0], [0], [1], [0, 0, 1, 1], [], []>} : vector<8x32xbf16>, vector<32x96xbf16>, vector<8x96xf32> -> vector<8x96xf32>
    %104 = vector.extract_strided_slice %6 {offsets = [24, 0], sizes = [8, 96], strides = [1, 1]} : vector<64x96xf32> to vector<8x96xf32>
    %105 = vector.extract_strided_slice %104 {offsets = [0, 0], sizes = [8, 32], strides = [1, 1]} : vector<8x96xf32> to vector<8x32xf32>
    %106 = vector.extract_strided_slice %103 {offsets = [0, 0], sizes = [8, 32], strides = [1, 1]} : vector<8x96xf32> to vector<8x32xf32>
    %107 = arith.addf %105, %106 : vector<8x32xf32>
    %108 = arith.negf %107 : vector<8x32xf32>
    %109 = math.exp %108 : vector<8x32xf32>
    %cst_23 = arith.constant 1.000000e+00 : f32
    %110 = vector.broadcast %cst_23 : f32 to vector<8x32xf32>
    %111 = arith.addf %110, %109 : vector<8x32xf32>
    %112 = arith.divf %110, %111 : vector<8x32xf32>
    %113 = vector.extract_strided_slice %104 {offsets = [0, 32], sizes = [8, 32], strides = [1, 1]} : vector<8x96xf32> to vector<8x32xf32>
    %114 = vector.extract_strided_slice %103 {offsets = [0, 32], sizes = [8, 32], strides = [1, 1]} : vector<8x96xf32> to vector<8x32xf32>
    %115 = arith.addf %113, %114 : vector<8x32xf32>
    %116 = arith.negf %115 : vector<8x32xf32>
    %117 = math.exp %116 : vector<8x32xf32>
    %cst_24 = arith.constant 1.000000e+00 : f32
    %118 = vector.broadcast %cst_24 : f32 to vector<8x32xf32>
    %119 = arith.addf %118, %117 : vector<8x32xf32>
    %120 = arith.divf %118, %119 : vector<8x32xf32>
    %121 = vector.extract_strided_slice %104 {offsets = [0, 64], sizes = [8, 32], strides = [1, 1]} : vector<8x96xf32> to vector<8x32xf32>
    %122 = vector.extract_strided_slice %103 {offsets = [0, 64], sizes = [8, 32], strides = [1, 1]} : vector<8x96xf32> to vector<8x32xf32>
    %123 = arith.addf %122, %9 : vector<8x32xf32>
    %124 = arith.mulf %112, %123 : vector<8x32xf32>
    %125 = arith.addf %121, %124 : vector<8x32xf32>
    %126 = math.tanh %125 : vector<8x32xf32>
    %cst_25 = arith.constant 1.000000e+00 : f32
    %127 = vector.broadcast %cst_25 : f32 to vector<8x32xf32>
    %128 = arith.subf %127, %120 : vector<8x32xf32>
    %129 = arith.mulf %128, %126 : vector<8x32xf32>
    %130 = arith.mulf %120, %101 : vector<8x32xf32>
    %131 = arith.addf %129, %130 : vector<8x32xf32>
    %132 = arith.truncf %131 : vector<8x32xf32> to vector<8x32xbf16>
    %cst_26 = arith.constant dense<0.000000e+00> : vector<8x96xf32>
    %133 = tpu.matmul %132, %10, %cst_26 {dimension_numbers = #tpu.dot_dimension_numbers<[1], [0], [0], [1], [0, 0, 1, 1], [], []>} : vector<8x32xbf16>, vector<32x96xbf16>, vector<8x96xf32> -> vector<8x96xf32>
    %134 = vector.extract_strided_slice %6 {offsets = [32, 0], sizes = [8, 96], strides = [1, 1]} : vector<64x96xf32> to vector<8x96xf32>
    %135 = vector.extract_strided_slice %134 {offsets = [0, 0], sizes = [8, 32], strides = [1, 1]} : vector<8x96xf32> to vector<8x32xf32>
    %136 = vector.extract_strided_slice %133 {offsets = [0, 0], sizes = [8, 32], strides = [1, 1]} : vector<8x96xf32> to vector<8x32xf32>
    %137 = arith.addf %135, %136 : vector<8x32xf32>
    %138 = arith.negf %137 : vector<8x32xf32>
    %139 = math.exp %138 : vector<8x32xf32>
    %cst_27 = arith.constant 1.000000e+00 : f32
    %140 = vector.broadcast %cst_27 : f32 to vector<8x32xf32>
    %141 = arith.addf %140, %139 : vector<8x32xf32>
    %142 = arith.divf %140, %141 : vector<8x32xf32>
    %143 = vector.extract_strided_slice %134 {offsets = [0, 32], sizes = [8, 32], strides = [1, 1]} : vector<8x96xf32> to vector<8x32xf32>
    %144 = vector.extract_strided_slice %133 {offsets = [0, 32], sizes = [8, 32], strides = [1, 1]} : vector<8x96xf32> to vector<8x32xf32>
    %145 = arith.addf %143, %144 : vector<8x32xf32>
    %146 = arith.negf %145 : vector<8x32xf32>
    %147 = math.exp %146 : vector<8x32xf32>
    %cst_28 = arith.constant 1.000000e+00 : f32
    %148 = vector.broadcast %cst_28 : f32 to vector<8x32xf32>
    %149 = arith.addf %148, %147 : vector<8x32xf32>
    %150 = arith.divf %148, %149 : vector<8x32xf32>
    %151 = vector.extract_strided_slice %134 {offsets = [0, 64], sizes = [8, 32], strides = [1, 1]} : vector<8x96xf32> to vector<8x32xf32>
    %152 = vector.extract_strided_slice %133 {offsets = [0, 64], sizes = [8, 32], strides = [1, 1]} : vector<8x96xf32> to vector<8x32xf32>
    %153 = arith.addf %152, %9 : vector<8x32xf32>
    %154 = arith.mulf %142, %153 : vector<8x32xf32>
    %155 = arith.addf %151, %154 : vector<8x32xf32>
    %156 = math.tanh %155 : vector<8x32xf32>
    %cst_29 = arith.constant 1.000000e+00 : f32
    %157 = vector.broadcast %cst_29 : f32 to vector<8x32xf32>
    %158 = arith.subf %157, %150 : vector<8x32xf32>
    %159 = arith.mulf %158, %156 : vector<8x32xf32>
    %160 = arith.mulf %150, %131 : vector<8x32xf32>
    %161 = arith.addf %159, %160 : vector<8x32xf32>
    %162 = arith.truncf %161 : vector<8x32xf32> to vector<8x32xbf16>
    %cst_30 = arith.constant dense<0.000000e+00> : vector<8x96xf32>
    %163 = tpu.matmul %162, %10, %cst_30 {dimension_numbers = #tpu.dot_dimension_numbers<[1], [0], [0], [1], [0, 0, 1, 1], [], []>} : vector<8x32xbf16>, vector<32x96xbf16>, vector<8x96xf32> -> vector<8x96xf32>
    %164 = vector.extract_strided_slice %6 {offsets = [40, 0], sizes = [8, 96], strides = [1, 1]} : vector<64x96xf32> to vector<8x96xf32>
    %165 = vector.extract_strided_slice %164 {offsets = [0, 0], sizes = [8, 32], strides = [1, 1]} : vector<8x96xf32> to vector<8x32xf32>
    %166 = vector.extract_strided_slice %163 {offsets = [0, 0], sizes = [8, 32], strides = [1, 1]} : vector<8x96xf32> to vector<8x32xf32>
    %167 = arith.addf %165, %166 : vector<8x32xf32>
    %168 = arith.negf %167 : vector<8x32xf32>
    %169 = math.exp %168 : vector<8x32xf32>
    %cst_31 = arith.constant 1.000000e+00 : f32
    %170 = vector.broadcast %cst_31 : f32 to vector<8x32xf32>
    %171 = arith.addf %170, %169 : vector<8x32xf32>
    %172 = arith.divf %170, %171 : vector<8x32xf32>
    %173 = vector.extract_strided_slice %164 {offsets = [0, 32], sizes = [8, 32], strides = [1, 1]} : vector<8x96xf32> to vector<8x32xf32>
    %174 = vector.extract_strided_slice %163 {offsets = [0, 32], sizes = [8, 32], strides = [1, 1]} : vector<8x96xf32> to vector<8x32xf32>
    %175 = arith.addf %173, %174 : vector<8x32xf32>
    %176 = arith.negf %175 : vector<8x32xf32>
    %177 = math.exp %176 : vector<8x32xf32>
    %cst_32 = arith.constant 1.000000e+00 : f32
    %178 = vector.broadcast %cst_32 : f32 to vector<8x32xf32>
    %179 = arith.addf %178, %177 : vector<8x32xf32>
    %180 = arith.divf %178, %179 : vector<8x32xf32>
    %181 = vector.extract_strided_slice %164 {offsets = [0, 64], sizes = [8, 32], strides = [1, 1]} : vector<8x96xf32> to vector<8x32xf32>
    %182 = vector.extract_strided_slice %163 {offsets = [0, 64], sizes = [8, 32], strides = [1, 1]} : vector<8x96xf32> to vector<8x32xf32>
    %183 = arith.addf %182, %9 : vector<8x32xf32>
    %184 = arith.mulf %172, %183 : vector<8x32xf32>
    %185 = arith.addf %181, %184 : vector<8x32xf32>
    %186 = math.tanh %185 : vector<8x32xf32>
    %cst_33 = arith.constant 1.000000e+00 : f32
    %187 = vector.broadcast %cst_33 : f32 to vector<8x32xf32>
    %188 = arith.subf %187, %180 : vector<8x32xf32>
    %189 = arith.mulf %188, %186 : vector<8x32xf32>
    %190 = arith.mulf %180, %161 : vector<8x32xf32>
    %191 = arith.addf %189, %190 : vector<8x32xf32>
    %192 = arith.truncf %191 : vector<8x32xf32> to vector<8x32xbf16>
    %cst_34 = arith.constant dense<0.000000e+00> : vector<8x96xf32>
    %193 = tpu.matmul %192, %10, %cst_34 {dimension_numbers = #tpu.dot_dimension_numbers<[1], [0], [0], [1], [0, 0, 1, 1], [], []>} : vector<8x32xbf16>, vector<32x96xbf16>, vector<8x96xf32> -> vector<8x96xf32>
    %194 = vector.extract_strided_slice %6 {offsets = [48, 0], sizes = [8, 96], strides = [1, 1]} : vector<64x96xf32> to vector<8x96xf32>
    %195 = vector.extract_strided_slice %194 {offsets = [0, 0], sizes = [8, 32], strides = [1, 1]} : vector<8x96xf32> to vector<8x32xf32>
    %196 = vector.extract_strided_slice %193 {offsets = [0, 0], sizes = [8, 32], strides = [1, 1]} : vector<8x96xf32> to vector<8x32xf32>
    %197 = arith.addf %195, %196 : vector<8x32xf32>
    %198 = arith.negf %197 : vector<8x32xf32>
    %199 = math.exp %198 : vector<8x32xf32>
    %cst_35 = arith.constant 1.000000e+00 : f32
    %200 = vector.broadcast %cst_35 : f32 to vector<8x32xf32>
    %201 = arith.addf %200, %199 : vector<8x32xf32>
    %202 = arith.divf %200, %201 : vector<8x32xf32>
    %203 = vector.extract_strided_slice %194 {offsets = [0, 32], sizes = [8, 32], strides = [1, 1]} : vector<8x96xf32> to vector<8x32xf32>
    %204 = vector.extract_strided_slice %193 {offsets = [0, 32], sizes = [8, 32], strides = [1, 1]} : vector<8x96xf32> to vector<8x32xf32>
    %205 = arith.addf %203, %204 : vector<8x32xf32>
    %206 = arith.negf %205 : vector<8x32xf32>
    %207 = math.exp %206 : vector<8x32xf32>
    %cst_36 = arith.constant 1.000000e+00 : f32
    %208 = vector.broadcast %cst_36 : f32 to vector<8x32xf32>
    %209 = arith.addf %208, %207 : vector<8x32xf32>
    %210 = arith.divf %208, %209 : vector<8x32xf32>
    %211 = vector.extract_strided_slice %194 {offsets = [0, 64], sizes = [8, 32], strides = [1, 1]} : vector<8x96xf32> to vector<8x32xf32>
    %212 = vector.extract_strided_slice %193 {offsets = [0, 64], sizes = [8, 32], strides = [1, 1]} : vector<8x96xf32> to vector<8x32xf32>
    %213 = arith.addf %212, %9 : vector<8x32xf32>
    %214 = arith.mulf %202, %213 : vector<8x32xf32>
    %215 = arith.addf %211, %214 : vector<8x32xf32>
    %216 = math.tanh %215 : vector<8x32xf32>
    %cst_37 = arith.constant 1.000000e+00 : f32
    %217 = vector.broadcast %cst_37 : f32 to vector<8x32xf32>
    %218 = arith.subf %217, %210 : vector<8x32xf32>
    %219 = arith.mulf %218, %216 : vector<8x32xf32>
    %220 = arith.mulf %210, %191 : vector<8x32xf32>
    %221 = arith.addf %219, %220 : vector<8x32xf32>
    %222 = arith.truncf %221 : vector<8x32xf32> to vector<8x32xbf16>
    %cst_38 = arith.constant dense<0.000000e+00> : vector<8x96xf32>
    %223 = tpu.matmul %222, %10, %cst_38 {dimension_numbers = #tpu.dot_dimension_numbers<[1], [0], [0], [1], [0, 0, 1, 1], [], []>} : vector<8x32xbf16>, vector<32x96xbf16>, vector<8x96xf32> -> vector<8x96xf32>
    %224 = vector.extract_strided_slice %6 {offsets = [56, 0], sizes = [8, 96], strides = [1, 1]} : vector<64x96xf32> to vector<8x96xf32>
    %225 = vector.extract_strided_slice %224 {offsets = [0, 0], sizes = [8, 32], strides = [1, 1]} : vector<8x96xf32> to vector<8x32xf32>
    %226 = vector.extract_strided_slice %223 {offsets = [0, 0], sizes = [8, 32], strides = [1, 1]} : vector<8x96xf32> to vector<8x32xf32>
    %227 = arith.addf %225, %226 : vector<8x32xf32>
    %228 = arith.negf %227 : vector<8x32xf32>
    %229 = math.exp %228 : vector<8x32xf32>
    %cst_39 = arith.constant 1.000000e+00 : f32
    %230 = vector.broadcast %cst_39 : f32 to vector<8x32xf32>
    %231 = arith.addf %230, %229 : vector<8x32xf32>
    %232 = arith.divf %230, %231 : vector<8x32xf32>
    %233 = vector.extract_strided_slice %224 {offsets = [0, 32], sizes = [8, 32], strides = [1, 1]} : vector<8x96xf32> to vector<8x32xf32>
    %234 = vector.extract_strided_slice %223 {offsets = [0, 32], sizes = [8, 32], strides = [1, 1]} : vector<8x96xf32> to vector<8x32xf32>
    %235 = arith.addf %233, %234 : vector<8x32xf32>
    %236 = arith.negf %235 : vector<8x32xf32>
    %237 = math.exp %236 : vector<8x32xf32>
    %cst_40 = arith.constant 1.000000e+00 : f32
    %238 = vector.broadcast %cst_40 : f32 to vector<8x32xf32>
    %239 = arith.addf %238, %237 : vector<8x32xf32>
    %240 = arith.divf %238, %239 : vector<8x32xf32>
    %241 = vector.extract_strided_slice %224 {offsets = [0, 64], sizes = [8, 32], strides = [1, 1]} : vector<8x96xf32> to vector<8x32xf32>
    %242 = vector.extract_strided_slice %223 {offsets = [0, 64], sizes = [8, 32], strides = [1, 1]} : vector<8x96xf32> to vector<8x32xf32>
    %243 = arith.addf %242, %9 : vector<8x32xf32>
    %244 = arith.mulf %232, %243 : vector<8x32xf32>
    %245 = arith.addf %241, %244 : vector<8x32xf32>
    %246 = math.tanh %245 : vector<8x32xf32>
    %cst_41 = arith.constant 1.000000e+00 : f32
    %247 = vector.broadcast %cst_41 : f32 to vector<8x32xf32>
    %248 = arith.subf %247, %240 : vector<8x32xf32>
    %249 = arith.mulf %248, %246 : vector<8x32xf32>
    %250 = arith.mulf %240, %221 : vector<8x32xf32>
    %251 = arith.addf %249, %250 : vector<8x32xf32>
    %c0_42 = arith.constant 0 : index
    %c0_43 = arith.constant 0 : index
    %252 = vector.load %arg5[%c0_42, %c0_43] : memref<33x2xf32, #tpu.memory_space<vmem>>, vector<32x2xf32>
    %253 = arith.truncf %252 : vector<32x2xf32> to vector<32x2xbf16>
    %c32 = arith.constant 32 : index
    %c0_44 = arith.constant 0 : index
    %254 = vector.load %arg5[%c32, %c0_44] : memref<33x2xf32, #tpu.memory_space<vmem>>, vector<1x2xf32>
    %255 = arith.truncf %251 : vector<8x32xf32> to vector<8x32xbf16>
    %cst_45 = arith.constant dense<0.000000e+00> : vector<8x2xf32>
    %256 = tpu.matmul %255, %253, %cst_45 {dimension_numbers = #tpu.dot_dimension_numbers<[1], [0], [0], [1], [0, 0, 1, 1], [], []>} : vector<8x32xbf16>, vector<32x2xbf16>, vector<8x2xf32> -> vector<8x2xf32>
    %257 = vector.broadcast %254 : vector<1x2xf32> to vector<8x2xf32>
    %258 = arith.addf %256, %257 : vector<8x2xf32>
    %259 = arith.negf %258 : vector<8x2xf32>
    %260 = math.exp %259 : vector<8x2xf32>
    %cst_46 = arith.constant 1.000000e+00 : f32
    %261 = vector.broadcast %cst_46 : f32 to vector<8x2xf32>
    %262 = arith.addf %261, %260 : vector<8x2xf32>
    %263 = arith.divf %261, %262 : vector<8x2xf32>
    %c0_47 = arith.constant 0 : index
    %c0_48 = arith.constant 0 : index
    %264 = vector.load %arg6[%c0_47, %c0_48] : memref<8x34xf32, #tpu.memory_space<vmem>>, vector<8x32xf32>
    tpu.vector_store %arg6[%c0_47, %c0_48], %251 {strides = array<i32>} : memref<8x34xf32, #tpu.memory_space<vmem>>, vector<8x32xf32>,
    %c0_49 = arith.constant 0 : index
    %c32_50 = arith.constant 32 : index
    %265 = vector.load %arg6[%c0_49, %c32_50] : memref<8x34xf32, #tpu.memory_space<vmem>>, vector<8x2xf32>
    tpu.vector_store %arg6[%c0_49, %c32_50], %263 {strides = array<i32>} : memref<8x34xf32, #tpu.memory_space<vmem>>, vector<8x2xf32>,
    return
  }
}

</mosaic_0001>

<bundles_post_ra>
// kernel: my_gru_forward.1
= control target key start
LH: loop header
LB: loop body
LE: loop exit
PB: predicated region body
PF: predicated region fallthrough
CT: control target
= control target key end

     0   :  { %vm55_vm0 = vcmask 1041408   ;;  %v1024_v0 = vmov 0.0   ;;  %vm1025_vm1 = vmmov 0   ;;  %vm42_vm2 = vcmask 31744   ;;  %s1026_s14 = smov 64   ;;  %s1028_s16 = smov 96   ;;  %s1271_s2 = inlined_call_operand.vmem [shape: bf16[4,96], index: 2, kind: input, shape index: {}]   ;;  %s1272_s3 = inlined_call_operand.vmem [shape: bf16[32,96], index: 3, kind: input, shape index: {}]   ;;  %s1273_s0 = inlined_call_operand.vmem [shape: f32[64,4], index: 0, kind: input, shape index: {}]   ;;  %s1274_s1 = inlined_call_operand.vmem [shape: f32[8,32], index: 1, kind: input, shape index: {}]   ;;  %s1275_s4 = inlined_call_operand.vmem [shape: f32[2,96], index: 4, kind: input, shape index: {}]   ;;  %s1276_s5 = inlined_call_operand.vmem [shape: f32[33,2], index: 5, kind: input, shape index: {}]   ;;  %s1277_s6 = inlined_call_operand.vmem [shape: f32[8,34], index: 6, kind: output, shape index: {}]  }
   0x1   :  { %892 = vmatprep.subr.bf16.mxu1 %v1024_v0  ;;  %v36_v1 = vld [vmem:[%s1271_s2] sm:$0x3]  ;;  %896 = vmatprep.mubr.msk.bf16.mxu1 %vm1025_vm1, %v1024_v0  ;;  %v25_v5 = vld [vmem:[%s1273_s0 + $0x8] sm:$0xff]  ;;  %v26_v7 = vld [vmem:[%s1273_s0 + $0x10] sm:$0xff]  ;;  %vm147_vm3 = vcmask 261120   ;;  %vm817_vm4 = vcmask 277760  }
   0x2   :  { %964 = vmatprep.subr.msk.bf16.mxu0 %vm55_vm0, %v36_v1  ;;  %v1073_v2 = vld [vmem:[%s1272_s3] sm:$0xff]   ;;  %v57_v3 = vsel %vm55_vm0, %v36_v1, 0  ;;  %v27_v8 = vld [vmem:[%s1273_s0 + $0x18] sm:$0xff]  ;;  %v1091_v10 = vld [vmem:[%s1272_s3 + $0x8] sm:$0xff]  }
   0x3   :  { %v24_v4 = vld [vmem:[%s1273_s0] sm:$0xff]  ;;  %883 = vmatpush3.bf16.msra.mxu0 %v57_v3  ;;  %893 = vmatpush3.bf16.msra.mxu1 %v1073_v2  ;;  %v33_v9 = vpack.c.bf16 %v27_v8, %v26_v7  ;;  %v29_v60 = vld [vmem:[%s1273_s0 + $0x28] sm:$0xff]  ;;  %v30_v61 = vld [vmem:[%s1273_s0 + $0x30] sm:$0xff] }
   0x4   :  { %v32_v6 = vpack.c.bf16 %v25_v5, %v24_v4  ;;  %v133_v11 = vld [vmem:[%s1274_s1] sm:$0xff]  ;;  %908 = vmatprep.subr.bf16.mxu0 %v1024_v0  ;;  %894 = vmatprep.subr.bf16.mxu1 %v1024_v0  ;;  %s1027_s1 = smov 32   ;;  %v31_v63 = vld [vmem:[%s1273_s0 + $0x38] sm:$0xff] }
   0x5   :  { %v828_v12 = vld [vmem:[%s1275_s4 + $0x1] ss:$0 sm:$0xff]  ;;  %v134_v13 = vpack.c.bf16 %v133_v11, %v133_v11  ;;  %v1129_v24 = vld [vmem:[%s1275_s4] ss:$0 sm:$0xff]  ;;  %v35_v1 = vpack.c.bf16 %v31_v63, %v30_v61 }
   0x6   :  { %884 = vmatprep.mubr.msk.bf16.mxu0 %vm42_vm2, %v32_v6  ;;  %199 = vrot.lane.b32.xlu0 %v828_v12, %s1026_s14  ;;  %v28_v59 = vld [vmem:[%s1273_s0 + $0x20] sm:$0xff] }
   0x7   :  { %885 = vmatmul.mubr.msk.bf16.vlgmr.msra.gmra.mrb[0].mxu0 %vm42_vm2, %v33_v9  ;;  %895 = vmatpush3.bf16.msra.mxu1 %v1091_v10  ;;  %v34_v62 = vpack.c.bf16 %v29_v60, %v28_v59 }
   0x8   :  { %909 = vmatpush3.bf16.msra.mxu0 %v1073_v2  ;;  %900 = vmatprep.subr.bf16.mxu1 %v1024_v0 }
   0x9   :  { %910 = vmatprep.subr.bf16.mxu0 %v1024_v0  ;;  %888 = vmatprep.mubr.msk.bf16.mxu0 %vm42_vm2, %v34_v62 }
   0xa   :  { %897 = vmatmul.mubr.msk.bf16.vlgmr.msra.gmra.mrb[0].mxu1 %vm147_vm3, %v134_v13 }
   0xb   :  { %901 = vmatpush3.bf16.msra.mxu1 %v1073_v2  ;;  %904 = vmatprep.mubr.msk.bf16.mxu1 %vm1025_vm1, %v1024_v0 }
   0xc   :  { %911 = vmatpush3.bf16.msra.mxu0 %v1091_v10  ;;  %902 = vmatprep.subr.bf16.mxu1 %v1024_v0 }
   0xd   :  { %924 = vmatprep.subr.bf16.mxu0 %v1024_v0 }
   0xf   :  { %903 = vmatpush3.bf16.msra.mxu1 %v1091_v10  ;;  %889 = vmatmul.mubr.msk.bf16.gmra.mrb[4].mxu0 %vm42_vm2, %v35_v1 }
  0x10   :  { %916 = vmatprep.subr.bf16.mxu1 %v1024_v0  ;;  %912 = vmatprep.mubr.msk.bf16.mxu0 %vm1025_vm1, %v1024_v0 }
  0x78   :  { %v1121_v17 = vpop.permute.xlu0 %199 }
  0xda   :  { %v1117_v14 = vpop.f32.mrb[0].mxu0 }
  0xdb   :  { %v93_v15 = vpop.f32.mrb[1].mxu0 }
  0xdc   :  { %v1119_v16 = vpop.f32.mrb[2].mxu0  ;;  %v94_v25 = vadd.f32 %v1129_v24, %v93_v15 }
  0xdd   :  { %v96_v18 = vpop.f32.mrb[3].mxu0  ;;  %v185_v19 = vpop.f32.mrb[0].mxu1 }
  0xde   :  { %v202_v20 = vadd.f32 %v1121_v17, %v185_v19  ;;  %v898_v21 = vpop.f32.mrb[1].mxu1  ;;  %v191_v26 = vadd.f32 %v185_v19, %v94_v25  ;;  %v97_v49 = vadd.f32 %v1129_v24, %v96_v18 }
  0xdf   :  { %v188_v22 = vpop.f32.mrb[2].mxu1 }
  0xe0   :  { %204 = vrot.lane.b32.xlu0 %v202_v20, %s1026_s14  ;;  %v899_v23 = vpop.f32.mrb[3].mxu1  ;;  %v832_v27 = vmul.f32 -1.442695, %v191_v26 }
  0xe2   :  { %972 = vpow2.f32 %v832_v27 }
  0xe4   :  { %221 = vrot.lane.b32.xlu0 %v133_v11, %s1027_s1  ;;  %v1164_v11 = vpop.f32.mrb[4].mxu0 }
  0xe5   :  { %v1166_v12 = vpop.f32.mrb[5].mxu0 }
  0xe6   :  { %v1168_v13 = vpop.f32.mrb[6].mxu0 }
  0xe7   :  { %v1170_v15 = vpop.f32.mrb[7].mxu0 }
  0xec   :  { %v973_v28 = vpop.eup %972 }
  0xed   :  { %v195_v29 = vadd.f32 1.0, %v973_v28 }
  0xef   :  { %974 = vrcp.f32 %v195_v29 }
  0xf9   :  { %v975_v30 = vpop.eup %974 }
  0xfa   :  { %v214_v37 = vsub.f32 1.0, %v975_v30 }
 0x152   :  { %v205_v31 = vpop.permute.xlu0 %204 }
 0x153   :  { %v207_v32 = vmul.f32 %v975_v30, %v205_v31 }
 0x155   :  { %209 = vrot.lane.b32.xlu1 %v207_v32, %s1026_s14 }
 0x156   :  { %v222_v36 = vpop.permute.xlu0 %221 }
 0x157   :  { %v224_v39 = vmul.f32 %v975_v30, %v222_v36 }
 0x1c7   :  { %v210_v33 = vpop.permute.xlu1 %209 }
 0x1c8   :  { %v212_v34 = vadd.f32 %v210_v33, %v94_v25  ;;  %v102_v25 = vadd.f32 %v1117_v14, %v1129_v24 }
 0x1ca   :  { %976 = vtanh.f32 %v212_v34 }
 0x1d4   :  { %v977_v35 = vpop.eup %976 }
 0x1d5   :  { %216 = vrot.lane.b32.xlu1 %v977_v35, %s1028_s16 }
 0x247   :  { %v217_v38 = vpop.permute.xlu1 %216 }
 0x248   :  { %v219_v40 = vmul.f32 %v217_v38, %v214_v37 }
 0x24a   :  { %v225_v41 = vadd.f32 %v224_v39, %v219_v40 }
 0x24c   :  { %v226_v42 = vpack.c.bf16 %v225_v41, %v225_v41 }
 0x24e   :  { %228 = vrot.lane.b32.xlu1 %v226_v42, %s1028_s16 }
 0x2c0   :  { %v229_v43 = vpop.permute.xlu1 %228 }
 0x2c1   :  { %905 = vmatmul.mubr.msk.bf16.vlgmr.msra.gmra.mrb[4].mxu1 %vm147_vm3, %v229_v43 }
 0x2c2   :  { %917 = vmatpush3.bf16.msra.mxu1 %v1073_v2  ;;  %920 = vmatprep.mubr.msk.bf16.mxu1 %vm1025_vm1, %v1024_v0 }
 0x2c3   :  { %918 = vmatprep.subr.bf16.mxu1 %v1024_v0 }
 0x2c6   :  { %919 = vmatpush3.bf16.msra.mxu1 %v1091_v10 }
 0x2c7   :  { %932 = vmatprep.subr.bf16.mxu1 %v1024_v0 }
 0x394   :  { %v267_v44 = vpop.f32.mrb[4].mxu1 }
 0x395   :  { %v280_v45 = vadd.f32 %v267_v44, %v1121_v17  ;;  %v906_v46 = vpop.f32.mrb[5].mxu1  ;;  %v273_v50 = vadd.f32 %v267_v44, %v97_v49 }
 0x396   :  { %v270_v47 = vpop.f32.mrb[6].mxu1 }
 0x397   :  { %282 = vrot.lane.b32.xlu0 %v280_v45, %s1026_s14  ;;  %v907_v48 = vpop.f32.mrb[7].mxu1  ;;  %v834_v51 = vmul.f32 -1.442695, %v273_v50  ;;  %v105_v47 = vadd.f32 %v1119_v16, %v1129_v24 }
 0x399   :  { %978 = vpow2.f32 %v834_v51 }
 0x3a3   :  { %v979_v52 = vpop.eup %978 }
 0x3a4   :  { %v277_v53 = vadd.f32 1.0, %v979_v52 }
 0x3a6   :  { %980 = vrcp.f32 %v277_v53 }
 0x3b0   :  { %v981_v54 = vpop.eup %980 }
 0x3b1   :  { %v292_v4 = vsub.f32 1.0, %v981_v54  ;;  %v298_v6 = vmul.f32 %v981_v54, %v225_v41 }
 0x409   :  { %v283_v55 = vpop.permute.xlu0 %282 }
 0x40a   :  { %v285_v56 = vmul.f32 %v981_v54, %v283_v55 }
 0x40c   :  { %287 = vrot.lane.b32.xlu1 %v285_v56, %s1026_s14 }
 0x47e   :  { %v288_v57 = vpop.permute.xlu1 %287 }
 0x47f   :  { %v290_v58 = vadd.f32 %v288_v57, %v97_v49 }
 0x481   :  { %982 = vtanh.f32 %v290_v58 }
 0x48b   :  { %v983_v3 = vpop.eup %982 }
 0x48c   :  { %294 = vrot.lane.b32.xlu0 %v983_v3, %s1028_s16 }
 0x4fe   :  { %v295_v5 = vpop.permute.xlu0 %294 }
 0x4ff   :  { %v297_v7 = vmul.f32 %v295_v5, %v292_v4 }
 0x501   :  { %v299_v8 = vadd.f32 %v298_v6, %v297_v7  ;;  %v110_v7 = vadd.f32 %v1129_v24, %v1166_v12 }
 0x503   :  { %v300_v9 = vpack.c.bf16 %v299_v8, %v299_v8 }
 0x505   :  { %302 = vrot.lane.b32.xlu1 %v300_v9, %s1028_s16 }
 0x577   :  { %v303_v18 = vpop.permute.xlu1 %302 }
 0x578   :  { %913 = vmatmul.mubr.msk.bf16.vlgmr.msra.gmra.mrb[8].mxu0 %vm147_vm3, %v303_v18 }
 0x579   :  { %925 = vmatpush3.bf16.msra.mxu0 %v1073_v2  ;;  %928 = vmatprep.mubr.msk.bf16.mxu0 %vm1025_vm1, %v1024_v0 }
 0x57a   :  { %926 = vmatprep.subr.bf16.mxu0 %v1024_v0 }
 0x57d   :  { %927 = vmatpush3.bf16.msra.mxu0 %v1091_v10 }
 0x57e   :  { %940 = vmatprep.subr.bf16.mxu0 %v1024_v0 }
 0x64b   :  { %v341_v19 = vpop.f32.mrb[8].mxu0 }
 0x64c   :  { %v354_v20 = vadd.f32 %v341_v19, %v1121_v17  ;;  %v914_v21 = vpop.f32.mrb[9].mxu0  ;;  %v347_v26 = vadd.f32 %v341_v19, %v102_v25 }
 0x64d   :  { %v344_v22 = vpop.f32.mrb[10].mxu0 }
 0x64e   :  { %356 = vrot.lane.b32.xlu0 %v354_v20, %s1026_s14  ;;  %v915_v23 = vpop.f32.mrb[11].mxu0  ;;  %v836_v27 = vmul.f32 -1.442695, %v347_v26 }
 0x650   :  { %984 = vpow2.f32 %v836_v27 }
 0x65a   :  { %v985_v28 = vpop.eup %984 }
 0x65b   :  { %v351_v29 = vadd.f32 1.0, %v985_v28 }
 0x65d   :  { %986 = vrcp.f32 %v351_v29 }
 0x667   :  { %v987_v30 = vpop.eup %986 }
 0x668   :  { %v366_v36 = vsub.f32 1.0, %v987_v30  ;;  %v372_v14 = vmul.f32 %v987_v30, %v299_v8 }
 0x6c0   :  { %v357_v31 = vpop.permute.xlu0 %356 }
 0x6c1   :  { %v359_v32 = vmul.f32 %v987_v30, %v357_v31 }
 0x6c3   :  { %361 = vrot.lane.b32.xlu1 %v359_v32, %s1026_s14 }
 0x735   :  { %v362_v33 = vpop.permute.xlu1 %361 }
 0x736   :  { %v364_v34 = vadd.f32 %v362_v33, %v102_v25 }
 0x738   :  { %988 = vtanh.f32 %v364_v34 }
 0x742   :  { %v989_v35 = vpop.eup %988 }
 0x743   :  { %368 = vrot.lane.b32.xlu0 %v989_v35, %s1028_s16 }
 0x7b5   :  { %v369_v37 = vpop.permute.xlu0 %368 }
 0x7b6   :  { %v371_v38 = vmul.f32 %v369_v37, %v366_v36 }
 0x7b8   :  { %v373_v39 = vadd.f32 %v372_v14, %v371_v38  ;;  %v113_v14 = vadd.f32 %v1129_v24, %v1170_v15 }
 0x7ba   :  { %v374_v40 = vpack.c.bf16 %v373_v39, %v373_v39 }
 0x7bc   :  { %376 = vrot.lane.b32.xlu1 %v374_v40, %s1028_s16 }
 0x82e   :  { %v377_v41 = vpop.permute.xlu1 %376 }
 0x82f   :  { %921 = vmatmul.mubr.msk.bf16.vlgmr.msra.gmra.mrb[8].mxu1 %vm147_vm3, %v377_v41 }
 0x830   :  { %933 = vmatpush3.bf16.msra.mxu1 %v1073_v2  ;;  %936 = vmatprep.mubr.msk.bf16.mxu1 %vm1025_vm1, %v1024_v0 }
 0x831   :  { %934 = vmatprep.subr.bf16.mxu1 %v1024_v0 }
 0x834   :  { %935 = vmatpush3.bf16.msra.mxu1 %v1091_v10 }
 0x835   :  { %948 = vmatprep.subr.bf16.mxu1 %v1024_v0 }
 0x902   :  { %v415_v42 = vpop.f32.mrb[8].mxu1 }
 0x903   :  { %v428_v43 = vadd.f32 %v415_v42, %v1121_v17  ;;  %v922_v44 = vpop.f32.mrb[9].mxu1  ;;  %v421_v48 = vadd.f32 %v415_v42, %v105_v47 }
 0x904   :  { %v418_v45 = vpop.f32.mrb[10].mxu1 }
 0x905   :  { %430 = vrot.lane.b32.xlu0 %v428_v43, %s1026_s14  ;;  %v923_v46 = vpop.f32.mrb[11].mxu1  ;;  %v838_v49 = vmul.f32 -1.442695, %v421_v48 }
 0x907   :  { %990 = vpow2.f32 %v838_v49 }
 0x911   :  { %v991_v50 = vpop.eup %990 }
 0x912   :  { %v425_v51 = vadd.f32 1.0, %v991_v50 }
 0x914   :  { %992 = vrcp.f32 %v425_v51 }
 0x91e   :  { %v993_v52 = vpop.eup %992 }
 0x91f   :  { %v440_v58 = vsub.f32 1.0, %v993_v52  ;;  %v446_v16 = vmul.f32 %v993_v52, %v373_v39 }
 0x977   :  { %v431_v53 = vpop.permute.xlu0 %430 }
 0x978   :  { %v433_v54 = vmul.f32 %v993_v52, %v431_v53 }
 0x97a   :  { %435 = vrot.lane.b32.xlu1 %v433_v54, %s1026_s14 }
 0x9ec   :  { %v436_v55 = vpop.permute.xlu1 %435 }
 0x9ed   :  { %v438_v56 = vadd.f32 %v436_v55, %v105_v47 }
 0x9ef   :  { %994 = vtanh.f32 %v438_v56 }
 0x9f9   :  { %v995_v57 = vpop.eup %994 }
 0x9fa   :  { %442 = vrot.lane.b32.xlu0 %v995_v57, %s1028_s16  ;;  %v118_v57 = vadd.f32 %v1164_v11, %v1129_v24 }
 0xa6c   :  { %v443_v59 = vpop.permute.xlu0 %442 }
 0xa6d   :  { %v445_v60 = vmul.f32 %v443_v59, %v440_v58 }
 0xa6f   :  { %v447_v61 = vadd.f32 %v446_v16, %v445_v60 }
 0xa71   :  { %v448_v62 = vpack.c.bf16 %v447_v61, %v447_v61 }
 0xa73   :  { %450 = vrot.lane.b32.xlu1 %v448_v62, %s1028_s16 }
 0xae5   :  { %v451_v63 = vpop.permute.xlu1 %450 }
 0xae6   :  { %929 = vmatmul.mubr.msk.bf16.vlgmr.msra.gmra.mrb[12].mxu0 %vm147_vm3, %v451_v63 }
 0xae7   :  { %941 = vmatpush3.bf16.msra.mxu0 %v1073_v2  ;;  %944 = vmatprep.mubr.msk.bf16.mxu0 %vm1025_vm1, %v1024_v0 }
 0xae8   :  { %942 = vmatprep.subr.bf16.mxu0 %v1024_v0 }
 0xaeb   :  { %943 = vmatpush3.bf16.msra.mxu0 %v1091_v10 }
 0xaec   :  { %956 = vmatprep.subr.bf16.mxu0 %v1024_v0 }
 0xbb9   :  { %v489_v1 = vpop.f32.mrb[12].mxu0 }
 0xbba   :  { %v502_v3 = vadd.f32 %v489_v1, %v1121_v17  ;;  %v930_v4 = vpop.f32.mrb[13].mxu0  ;;  %v495_v8 = vadd.f32 %v489_v1, %v110_v7 }
 0xbbb   :  { %v492_v5 = vpop.f32.mrb[14].mxu0 }
 0xbbc   :  { %504 = vrot.lane.b32.xlu0 %v502_v3, %s1026_s14  ;;  %v931_v6 = vpop.f32.mrb[15].mxu0  ;;  %v840_v9 = vmul.f32 -1.442695, %v495_v8 }
 0xbbe   :  { %996 = vpow2.f32 %v840_v9 }
 0xbc8   :  { %v997_v18 = vpop.eup %996 }
 0xbc9   :  { %v499_v19 = vadd.f32 1.0, %v997_v18 }
 0xbcb   :  { %998 = vrcp.f32 %v499_v19 }
 0xbd5   :  { %v999_v20 = vpop.eup %998 }
 0xbd6   :  { %v514_v27 = vsub.f32 1.0, %v999_v20  ;;  %v520_v12 = vmul.f32 %v999_v20, %v447_v61 }
 0xc2e   :  { %v505_v21 = vpop.permute.xlu0 %504 }
 0xc2f   :  { %v507_v22 = vmul.f32 %v999_v20, %v505_v21 }
 0xc31   :  { %509 = vrot.lane.b32.xlu1 %v507_v22, %s1026_s14 }
 0xca3   :  { %v510_v23 = vpop.permute.xlu1 %509 }
 0xca4   :  { %v512_v25 = vadd.f32 %v510_v23, %v110_v7 }
 0xca6   :  { %1000 = vtanh.f32 %v512_v25  ;;  %v121_v25 = vadd.f32 %v1168_v13, %v1129_v24  ;;  %v745_v24 = vld [vmem:[%s1276_s5 + $0x8] sm:$0xff]  ;;  %v746_v13 = vld [vmem:[%s1276_s5 + $0x10] sm:$0xff] }
 0xcb0   :  { %v1001_v26 = vpop.eup %1000 }
 0xcb1   :  { %516 = vrot.lane.b32.xlu0 %v1001_v26, %s1028_s16 }
 0xd23   :  { %v517_v28 = vpop.permute.xlu0 %516 }
 0xd24   :  { %v519_v29 = vmul.f32 %v517_v28, %v514_v27 }
 0xd26   :  { %v521_v30 = vadd.f32 %v520_v12, %v519_v29 }
 0xd28   :  { %v522_v31 = vpack.c.bf16 %v521_v30, %v521_v30 }
 0xd2a   :  { %524 = vrot.lane.b32.xlu1 %v522_v31, %s1028_s16 }
 0xd9c   :  { %v525_v32 = vpop.permute.xlu1 %524 }
 0xd9d   :  { %937 = vmatmul.mubr.msk.bf16.vlgmr.msra.gmra.mrb[12].mxu1 %vm147_vm3, %v525_v32 }
 0xd9e   :  { %949 = vmatpush3.bf16.msra.mxu1 %v1073_v2  ;;  %952 = vmatprep.mubr.msk.bf16.mxu1 %vm1025_vm1, %v1024_v0 }
 0xd9f   :  { %950 = vmatprep.subr.bf16.mxu1 %v1024_v0 }
 0xda2   :  { %951 = vmatpush3.bf16.msra.mxu1 %v1091_v10 }
 0xe70   :  { %v563_v33 = vpop.f32.mrb[12].mxu1 }
 0xe71   :  { %v576_v34 = vadd.f32 %v563_v33, %v1121_v17  ;;  %v938_v35 = vpop.f32.mrb[13].mxu1  ;;  %v569_v38 = vadd.f32 %v563_v33, %v113_v14  ;;  %v744_v33 = vld [vmem:[%s1276_s5] sm:$0xff] }
 0xe72   :  { %v566_v36 = vpop.f32.mrb[14].mxu1  ;;  %v747_v35 = vld [vmem:[%s1276_s5 + $0x18] sm:$0xff] }
 0xe73   :  { %578 = vrot.lane.b32.xlu0 %v576_v34, %s1026_s14  ;;  %v939_v37 = vpop.f32.mrb[15].mxu1  ;;  %v842_v2 = vmul.f32 -1.442695, %v569_v38  ;;  %v748_v34 = vpack.c.bf16 %v745_v24, %v744_v33  ;;  %v749_v36 = vpack.c.bf16 %v747_v35, %v746_v13 }
 0xe75   :  { %1002 = vpow2.f32 %v842_v2 }
 0xe7f   :  { %v1003_v39 = vpop.eup %1002 }
 0xe80   :  { %v573_v40 = vadd.f32 1.0, %v1003_v39 }
 0xe82   :  { %1004 = vrcp.f32 %v573_v40 }
 0xe8c   :  { %v1005_v41 = vpop.eup %1004 }
 0xe8d   :  { %v588_v46 = vsub.f32 1.0, %v1005_v41  ;;  %v594_v15 = vmul.f32 %v1005_v41, %v521_v30 }
 0xee5   :  { %v579_v42 = vpop.permute.xlu0 %578 }
 0xee6   :  { %v581_v10 = vmul.f32 %v1005_v41, %v579_v42 }
 0xee8   :  { %583 = vrot.lane.b32.xlu1 %v581_v10, %s1026_s14  ;;  %v847_v10 = vld [vmem:[%s1276_s5 + $0x20] ss:$0 sm:$0xff] }
 0xf5a   :  { %v584_v43 = vpop.permute.xlu1 %583 }
 0xf5b   :  { %v586_v44 = vadd.f32 %v584_v43, %v113_v14 }
 0xf5d   :  { %1006 = vtanh.f32 %v586_v44 }
 0xf67   :  { %v1007_v45 = vpop.eup %1006 }
 0xf68   :  { %590 = vrot.lane.b32.xlu0 %v1007_v45, %s1028_s16 }
 0xfda   :  { %v591_v47 = vpop.permute.xlu0 %590 }
 0xfdb   :  { %v593_v48 = vmul.f32 %v591_v47, %v588_v46 }
 0xfdd   :  { %v595_v49 = vadd.f32 %v594_v15, %v593_v48 }
 0xfdf   :  { %v596_v50 = vpack.c.bf16 %v595_v49, %v595_v49 }
 0xfe1   :  { %598 = vrot.lane.b32.xlu1 %v596_v50, %s1028_s16 }
0x1053   :  { %v599_v51 = vpop.permute.xlu1 %598 }
0x1054   :  { %945 = vmatmul.mubr.msk.bf16.vlgmr.msra.gmra.mrb[16].mxu0 %vm147_vm3, %v599_v51 }
0x1055   :  { %960 = vmatprep.mubr.msk.bf16.mxu0 %vm1025_vm1, %v1024_v0  ;;  %957 = vmatpush3.bf16.msra.mxu0 %v748_v34 }
0x1056   :  { %958 = vmatprep.subr.bf16.mxu0 %v1024_v0 }
0x1059   :  { %959 = vmatpush3.bf16.msra.mxu0 %v749_v36 }
0x1127   :  { %v637_v52 = vpop.f32.mrb[16].mxu0 }
0x1128   :  { %v650_v53 = vadd.f32 %v637_v52, %v1121_v17  ;;  %v946_v54 = vpop.f32.mrb[17].mxu0  ;;  %v643_v58 = vadd.f32 %v637_v52, %v118_v57 }
0x1129   :  { %v640_v55 = vpop.f32.mrb[18].mxu0 }
0x112a   :  { %652 = vrot.lane.b32.xlu0 %v650_v53, %s1026_s14  ;;  %v947_v56 = vpop.f32.mrb[19].mxu0  ;;  %v844_v59 = vmul.f32 -1.442695, %v643_v58 }
0x112c   :  { %1008 = vpow2.f32 %v844_v59 }
0x1136   :  { %v1009_v16 = vpop.eup %1008 }
0x1137   :  { %v647_v60 = vadd.f32 1.0, %v1009_v16 }
0x1139   :  { %1010 = vrcp.f32 %v647_v60 }
0x1143   :  { %v1011_v61 = vpop.eup %1010 }
0x1144   :  { %v662_v5 = vsub.f32 1.0, %v1011_v61  ;;  %v668_v11 = vmul.f32 %v1011_v61, %v595_v49 }
0x119c   :  { %v653_v62 = vpop.permute.xlu0 %652 }
0x119d   :  { %v655_v63 = vmul.f32 %v1011_v61, %v653_v62 }
0x119f   :  { %657 = vrot.lane.b32.xlu1 %v655_v63, %s1026_s14 }
0x1211   :  { %v658_v1 = vpop.permute.xlu1 %657 }
0x1212   :  { %v660_v3 = vadd.f32 %v658_v1, %v118_v57 }
0x1214   :  { %1012 = vtanh.f32 %v660_v3 }
0x121e   :  { %v1013_v4 = vpop.eup %1012 }
0x121f   :  { %664 = vrot.lane.b32.xlu0 %v1013_v4, %s1028_s16 }
0x1291   :  { %v665_v6 = vpop.permute.xlu0 %664 }
0x1292   :  { %v667_v7 = vmul.f32 %v665_v6, %v662_v5 }
0x1294   :  { %v669_v8 = vadd.f32 %v668_v11, %v667_v7 }
0x1296   :  { %v670_v9 = vpack.c.bf16 %v669_v8, %v669_v8 }
0x1298   :  { %672 = vrot.lane.b32.xlu1 %v670_v9, %s1028_s16 }
0x130a   :  { %v673_v18 = vpop.permute.xlu1 %672 }
0x130b   :  { %953 = vmatmul.mubr.msk.bf16.vlgmr.msra.gmra.mrb[16].mxu1 %vm147_vm3, %v673_v18 }
0x13de   :  { %v711_v19 = vpop.f32.mrb[16].mxu1 }
0x13df   :  { %v724_v20 = vadd.f32 %v711_v19, %v1121_v17  ;;  %v954_v21 = vpop.f32.mrb[17].mxu1  ;;  %v717_v26 = vadd.f32 %v711_v19, %v121_v25 }
0x13e0   :  { %v714_v22 = vpop.f32.mrb[18].mxu1 }
0x13e1   :  { %726 = vrot.lane.b32.xlu0 %v724_v20, %s1026_s14  ;;  %v955_v23 = vpop.f32.mrb[19].mxu1  ;;  %v846_v27 = vmul.f32 -1.442695, %v717_v26 }
0x13e3   :  { %1014 = vpow2.f32 %v846_v27 }
0x13ed   :  { %v1015_v28 = vpop.eup %1014 }
0x13ee   :  { %v721_v12 = vadd.f32 1.0, %v1015_v28 }
0x13f0   :  { %1016 = vrcp.f32 %v721_v12 }
0x13fa   :  { %v1017_v29 = vpop.eup %1016 }
0x13fb   :  { %v736_v14 = vsub.f32 1.0, %v1017_v29  ;;  %v742_v2 = vmul.f32 %v1017_v29, %v669_v8 }
0x1453   :  { %v727_v30 = vpop.permute.xlu0 %726 }
0x1454   :  { %v729_v31 = vmul.f32 %v1017_v29, %v727_v30 }
0x1456   :  { %731 = vrot.lane.b32.xlu1 %v729_v31, %s1026_s14 }
0x14c8   :  { %v732_v17 = vpop.permute.xlu1 %731 }
0x14c9   :  { %v734_v32 = vadd.f32 %v732_v17, %v121_v25 }
0x14cb   :  { %1018 = vtanh.f32 %v734_v32 }
0x14d5   :  { %v1019_v37 = vpop.eup %1018 }
0x14d6   :  { %738 = vrot.lane.b32.xlu0 %v1019_v37, %s1028_s16 }
0x1548   :  { %v739_v38 = vpop.permute.xlu0 %738 }
0x1549   :  { %v741_v39 = vmul.f32 %v739_v38, %v736_v14 }
0x154b   :  { %v743_v40 = vadd.f32 %v742_v2, %v741_v39 }
0x154d   :  { %809 = vrot.lane.b32.xlu0 %v743_v40, %s1028_s16  ;;  %v751_v41 = vpack.c.bf16 %v743_v40, %v743_v40 }
0x154f   :  { %757 = vrot.lane.b32.xlu1 %v751_v41, %s1028_s16 }
0x15bf   :  { %v810_v42 = vpop.permute.xlu0 %809 }
0x15c0   :  { %812 = vst.msk [vmem:[%s1277_s6] sm:$0xff] %vm147_vm3, %v810_v42 }
0x15c1   :  { %v758_v0 = vpop.permute.xlu1 %757 }
0x15c2   :  { %961 = vmatmul.mubr.msk.bf16.vlgmr.msra.gmra.mrb[20].mxu0 %vm147_vm3, %v758_v0 }
0x1695   :  { %v796_v43 = vpop.f32.mrb[20].mxu0 }
0x1696   :  { %v797_v44 = vadd.f32 %v847_v10, %v796_v43  ;;  %v962_v45 = vpop.f32.mrb[21].mxu0 }
0x1697   :  { %v799_v46 = vpop.f32.mrb[22].mxu0 }
0x1698   :  { %v849_v47 = vmul.f32 -1.442695, %v797_v44  ;;  %v963_v15 = vpop.f32.mrb[23].mxu0 }
0x169a   :  { %1020 = vpow2.f32 %v849_v47 }
0x16a4   :  { %v1021_v48 = vpop.eup %1020 }
0x16a5   :  { %v805_v49 = vadd.f32 1.0, %v1021_v48 }
0x16a7   :  { %1022 = vrcp.f32 %v805_v49 }
0x16b1   :  { %v1023_v50 = vpop.eup %1022 }
0x16b2   :  { %814 = vrot.lane.b32.xlu1 %v1023_v50, %s1027_s1 }
0x1724   :  { %v815_v51 = vpop.permute.xlu1 %814 }
0x1725   :  { %818 = vst.msk [vmem:[%s1277_s6] sm:$0xff] %vm817_vm4, %v815_v51 }

</bundles_post_ra>
